<compile_context>
chip_gen: v7x
topology: tpu7x:2x2x1
jax: 0.10.0
libtpu: 0.0.40
codegen_flags: <defaults>
</compile_context>

<pallas_src>
import functools
import numpy as np
import jax
import jax.numpy as jnp
from jax.experimental import pallas as pl
from jax.experimental.pallas import tpu as pltpu

THRESH = 0.5   # TODO(synk): global `thresh` not in source snippet; SpikeDHS default.
DECAY = 0.2    # TODO(synk): global `decay` not in source snippet; unused for is_first==1.

# ---- small config consistent with newModel's constructor (scaled down) ----
FILTER_MULTIPLIER = 4
BLOCK_MULTIPLIER = 3
STEPS = 3
NUM_LAYERS = 3
INITIAL_CHANNELS = 3
FILTER_PARAM_DICT = {0: 1, 1: 2, 2: 4, 3: 8}


def _round_up(v, m):
    return ((v + m - 1) // m) * m


def _choose_tm(m):
    """Row tile: multiple of 16 (bf16 sublanes); 1 grid step for small M, 2 equal steps
    (megacore-friendly on v7x) only when M is large enough to be worth splitting."""
    mp = _round_up(m, 16)
    if mp <= 256:
        return mp
    if mp <= 1024 and mp % 32 == 0:
        return mp // 2
    return 256


def _vmem_limit_bytes(tm, kp_list, n_out):
    """Explicit per-call VMEM cap; clamp well under v7x's 64 MiB physical per-TC VMEM."""
    blk = tm * n_out * 2                                    # bf16 output tile
    for kp in kp_list:
        blk += tm * kp * 2 + kp * n_out * 2 + n_out * 4     # bf16 x, bf16 w, f32 shift
    need = 4 * blk + (2 << 20)                              # 2x double-buffer, 2x headroom
    return int(min(max(need, 4 << 20), 48 << 20))


# ----------------------------------------------------------------------------
# Pallas kernels
# ----------------------------------------------------------------------------
def _matmul_shift_act_kernel(x_ref, w_ref, sh_ref, o_ref, *, act):
    """(tm,Kp)x(Kp,Np) MXU dot + folded-BN shift + activation; f32 epilogue, bf16 store."""
    y = jnp.dot(x_ref[...], w_ref[...], preferred_element_type=jnp.float32) + sh_ref[...]
    if act == "relu":
        y = jnp.maximum(y, 0.0)
    elif act == "lif":
        # fresh membrane (mem == 0): spike = Heaviside(mem + y - THRESH)
        y = (y > THRESH).astype(jnp.float32)
    elif act == "relu_lif":
        y = (jnp.maximum(y, 0.0) > THRESH).astype(jnp.float32)
    o_ref[...] = y.astype(o_ref.dtype)


def _fused_cell_kernel(x0_ref, w0_ref, sh0_ref, x1_ref, w1_ref, sh1_ref, o_ref):
    """Whole Cell: per-step weights stacked along N.  Two MXU dots, relu each branch,
    accumulate into one buffer, Heaviside spike -> the Cell's channel-concat output."""
    y = jnp.maximum(
        jnp.dot(x0_ref[...], w0_ref[...], preferred_element_type=jnp.float32) + sh0_ref[...],
        0.0)
    y = y + jnp.maximum(
        jnp.dot(x1_ref[...], w1_ref[...], preferred_element_type=jnp.float32) + sh1_ref[...],
        0.0)
    o_ref[...] = (y > THRESH).astype(o_ref.dtype)


def _spike_kernel(s_ref, o_ref):
    o_ref[...] = (s_ref[...] > THRESH).astype(o_ref.dtype)


def matmul_shift_act(xp, p, act="none"):
    """xp: (M, Kp) bf16 patches (already K-padded); p holds folded bf16 w and f32 shift."""
    M = xp.shape[0]
    Kp, Np = p["w"].shape
    tm = _choose_tm(M)
    Mp = _round_up(M, tm)
    if Mp != M:
        xp = jnp.pad(xp, ((0, Mp - M), (0, 0)))
    out = pl.pallas_call(
        functools.partial(_matmul_shift_act_kernel, act=act),
        grid=(Mp // tm,),
        in_specs=[
            pl.BlockSpec((tm, Kp), lambda i: (i, 0)),
            pl.BlockSpec((Kp, Np), lambda i: (0, 0)),
            pl.BlockSpec((1, Np), lambda i: (0, 0)),
        ],
        out_specs=pl.BlockSpec((tm, Np), lambda i: (i, 0)),
        out_shape=jax.ShapeDtypeStruct((Mp, Np), jnp.bfloat16),
        compiler_params=pltpu.CompilerParams(
            dimension_semantics=("parallel",),
            vmem_limit_bytes=_vmem_limit_bytes(tm, [Kp], Np)),
    )(xp, p["w"], p["shift"])
    return out[:M, :p["n_orig"]]


def fused_cell_call(x0, x1, fp):
    """One pallas_call per Cell: stacked-N weights, two dots, fused relu/sum/spike."""
    M = x0.shape[0]
    K0p, Np = fp["w0"].shape
    K1p, _ = fp["w1"].shape
    tm = _choose_tm(M)
    Mp = _round_up(M, tm)
    if Mp != M:
        x0 = jnp.pad(x0, ((0, Mp - M), (0, 0)))
        x1 = jnp.pad(x1, ((0, Mp - M), (0, 0)))
    out = pl.pallas_call(
        _fused_cell_kernel,
        grid=(Mp // tm,),
        in_specs=[
            pl.BlockSpec((tm, K0p), lambda i: (i, 0)),
            pl.BlockSpec((K0p, Np), lambda i: (0, 0)),
            pl.BlockSpec((1, Np), lambda i: (0, 0)),
            pl.BlockSpec((tm, K1p), lambda i: (i, 0)),
            pl.BlockSpec((K1p, Np), lambda i: (0, 0)),
            pl.BlockSpec((1, Np), lambda i: (0, 0)),
        ],
        out_specs=pl.BlockSpec((tm, Np), lambda i: (i, 0)),
        out_shape=jax.ShapeDtypeStruct((Mp, Np), jnp.bfloat16),
        compiler_params=pltpu.CompilerParams(
            dimension_semantics=("parallel",),
            vmem_limit_bytes=_vmem_limit_bytes(tm, [K0p, K1p], Np)),
    )(x0, fp["w0"], fp["sh0"], x1, fp["w1"], fp["sh1"])
    return out[:M, :fp["n_orig"]]


def heaviside_spike(s):
    """Lane-dense elementwise Heaviside spike (generic fallback path only)."""
    shape = s.shape
    flat = s.reshape(-1)
    n = flat.shape[0]
    npad = _round_up(n, 8 * 128)
    x2 = jnp.pad(flat, (0, npad - n)).reshape(-1, 128)
    out = pl.pallas_call(
        _spike_kernel,
        out_shape=jax.ShapeDtypeStruct(x2.shape, jnp.bfloat16),
    )(x2)
    return out.reshape(-1)[:n].reshape(shape)


# ----------------------------------------------------------------------------
# Plain-JAX glue: im2col (K-pad folded in), bilinear resize (align_corners=True)
# ----------------------------------------------------------------------------
def im2col(x, kh, kw, stride, pad, kp):
    """Build (M, Kp) bf16 patch matrix; K zero-pad is appended once here (no extra pad op)."""
    x = x.astype(jnp.bfloat16)
    B, H, W, C = x.shape
    if pad > 0:
        x = jnp.pad(x, ((0, 0), (pad, pad), (pad, pad), (0, 0)))
    Ho = (H + 2 * pad - kh) // stride + 1
    Wo = (W + 2 * pad - kw) // stride + 1
    cols = []
    for i in range(kh):
        for j in range(kw):
            cols.append(
                x[:, i:i + stride * (Ho - 1) + 1:stride,
                  j:j + stride * (Wo - 1) + 1:stride, :])
    k = kh * kw * C
    if kp > k:
        cols.append(jnp.zeros((B, Ho, Wo, kp - k), jnp.bfloat16))
    patches = jnp.concatenate(cols, axis=-1)
    return patches.reshape(B * Ho * Wo, kp), Ho, Wo


def conv_bn_act(x, p, act="none"):
    patches, Ho, Wo = im2col(x, p["kh"], p["kw"], p["stride"], p["pad"], p["kp"])
    out = matmul_shift_act(patches, p, act=act)
    return out.reshape(x.shape[0], Ho, Wo, p["n_orig"])


def bilinear_resize_align_corners(x, out_h, out_w):
    """Matches F.interpolate(..., mode='bilinear', align_corners=True) on NHWC."""
    B, H, W, C = x.shape
    if (H, W) == (out_h, out_w):
        return x
    ys = (jnp.arange(out_h, dtype=jnp.float32) * ((H - 1) / (out_h - 1))
          if out_h > 1 else jnp.zeros((1,), jnp.float32))
    xs = (jnp.arange(out_w, dtype=jnp.float32) * ((W - 1) / (out_w - 1))
          if out_w > 1 else jnp.zeros((1,), jnp.float32))
    y0 = jnp.floor(ys).astype(jnp.int32)
    x0 = jnp.floor(xs).astype(jnp.int32)
    y1 = jnp.minimum(y0 + 1, H - 1)
    x1 = jnp.minimum(x0 + 1, W - 1)
    wy = (ys - y0.astype(jnp.float32))[None, :, None, None]
    wx = (xs - x0.astype(jnp.float32))[None, None, :, None]

    def gather(yi, xi):
        return x[:, yi][:, :, xi]

    v00, v01 = gather(y0, x0), gather(y0, x1)
    v10, v11 = gather(y1, x0), gather(y1, x1)
    top = v00 * (1.0 - wx) + v01 * wx
    bot = v10 * (1.0 - wx) + v11 * wx
    return top * (1.0 - wy) + bot * wy


def scale_dimension(dim, scale):
    return int((float(dim) - 1.0) * scale + 1.0) if dim % 2 == 1 else int(float(dim) * scale)


# ----------------------------------------------------------------------------
# Parameter construction (BN scale folded into weights in f32, then bf16; padded once)
# ----------------------------------------------------------------------------
def _init_conv_folded(key, kh, kw, cin, cout):
    k = kh * kw * cin
    w = jax.random.normal(key, (k, cout), dtype=jnp.float32) * (1.0 / np.sqrt(k))
    gamma = jnp.ones((cout,), jnp.float32)    # BN scale (gamma / sqrt(var)); folded into w
    beta = jnp.zeros((cout,), jnp.float32)    # BN shift (beta - mean*scale); kept in epilogue
    return w * gamma[None, :], beta


def init_conv_params(key, kh, kw, cin, cout, stride, pad):
    w, beta = _init_conv_folded(key, kh, kw, cin, cout)
    k = kh * kw * cin
    kp = _round_up(k, 128)
    npad = _round_up(cout, 128)
    return dict(
        w=jnp.pad(w, ((0, kp - k), (0, npad - cout))).astype(jnp.bfloat16),
        shift=jnp.pad(beta[None, :], ((0, 0), (0, npad - cout))),
        kh=kh, kw=kw, stride=stride, pad=pad, kp=kp, n_orig=cout)


def build_cell_params(key, c_prev_prev, c_prev, c_out, cell_arch, steps, bm, downup_sample):
    branches = sorted(int(b) for b in cell_arch[:, 0])
    sel_per_step = []
    offset = 0
    n_states = 2
    for _ in range(steps):
        sel_per_step.append([j for j in range(n_states) if (offset + j) in branches])
        offset += n_states
        n_states += 1
    fusable = (bm == steps) and all(sel == [0, 1] for sel in sel_per_step)

    cp = dict(steps=steps, block_multiplier=bm, downup_sample=downup_sample,
              c_out=c_out, branches=branches, fused=None, ops=None)

    if fusable:
        # TODO(synk): OPS_C2B_ANN_BR[primitive] undefined -> 3x3 conv+BN+ReLU surrogate.
        # Stack the 3 per-step weights of each branch along N -> one RHS per branch; the
        # kernel then emits the Cell's channel-concat (steps*c_out) directly.
        k0, k1 = 9 * c_prev_prev, 9 * c_prev
        k0p, k1p = _round_up(k0, 128), _round_up(k1, 128)
        n_out = steps * c_out
        npad = _round_up(n_out, 128)
        keys = jax.random.split(key, 2 * steps)
        w0s, w1s, sh0s, sh1s = [], [], [], []
        for s in range(steps):
            w, b = _init_conv_folded(keys[2 * s], 3, 3, c_prev_prev, c_out)
            w0s.append(w); sh0s.append(b)
            w, b = _init_conv_folded(keys[2 * s + 1], 3, 3, c_prev, c_out)
            w1s.append(w); sh1s.append(b)
        w0 = jnp.concatenate(w0s, axis=1)
        w1 = jnp.concatenate(w1s, axis=1)
        sh0 = jnp.concatenate(sh0s)[None, :]
        sh1 = jnp.concatenate(sh1s)[None, :]
        cp["fused"] = dict(
            w0=jnp.pad(w0, ((0, k0p - k0), (0, npad - n_out))).astype(jnp.bfloat16),
            w1=jnp.pad(w1, ((0, k1p - k1), (0, npad - n_out))).astype(jnp.bfloat16),
            sh0=jnp.pad(sh0, ((0, 0), (0, npad - n_out))),
            sh1=jnp.pad(sh1, ((0, 0), (0, npad - n_out))),
            k0p=k0p, k1p=k1p, n_orig=n_out)
        return cp

    # Generic fallback (non-{s0,s1} cell_arch): one 3x3 conv+BN+ReLU surrogate per branch.
    keys = jax.random.split(key, max(len(branches), 1))
    ops = []
    ki = 0
    offset = 0
    n_states = 2
    for _ in range(steps):
        for j in range(n_states):
            if (offset + j) in branches:
                cin = c_prev_prev if j == 0 else (c_prev if j == 1 else c_out)
                ops.append(init_conv_params(keys[ki], 3, 3, cin, c_out, 1, 1))
                ki += 1
        offset += n_states
        n_states += 1
    cp["ops"] = ops
    return cp


def build_model(key, network_arch, cell_arch):
    fm = FILTER_MULTIPLIER
    bm = BLOCK_MULTIPLIER
    half_f = fm // 2
    keys = jax.random.split(key, 2 + NUM_LAYERS)

    params = {}
    # spade_type == 0 stems
    params["stem0"] = init_conv_params(keys[0], 1, 1, INITIAL_CHANNELS, half_f * bm, 1, 0)
    params["stem2"] = init_conv_params(keys[1], 3, 3, half_f * bm, fm * bm, 2, 1)

    cells = []
    for i in range(NUM_LAYERS):
        level = int(network_arch[i].sum(axis=1).argmax())
        prev_level = int(network_arch[i - 1].sum(axis=1).argmax())
        prev_prev_level = int(network_arch[i - 2].sum(axis=1).argmax())
        if i == 0:
            downup = -int(network_arch[0].sum(axis=1).argmax())
            prev_prev_fm = fm / 2.0
            prev_fm = float(fm)
        elif i == 1:
            downup = int(network_arch[i].sum(axis=0).argmax()) - 1
            prev_prev_fm = float(fm)
            prev_fm = float(fm * FILTER_PARAM_DICT[prev_level])
        else:
            downup = int(network_arch[i].sum(axis=0).argmax()) - 1
            prev_prev_fm = float(fm * FILTER_PARAM_DICT[prev_prev_level])
            prev_fm = float(fm * FILTER_PARAM_DICT[prev_level])
        c_out = fm * FILTER_PARAM_DICT[level]
        c_prev_prev = int(bm * prev_prev_fm)
        c_prev = int(bm * prev_fm)
        cells.append(build_cell_params(keys[2 + i], c_prev_prev, c_prev, c_out,
                                       cell_arch, STEPS, bm, downup))
    params["cells"] = cells
    return params


# ----------------------------------------------------------------------------
# Forward pass (mirrors newModel.forward / Cell.forward, spade_type == 0)
# ----------------------------------------------------------------------------
def cell_forward(cp, prev_prev_input, prev_input):
    s0, s1 = prev_prev_input, prev_input
    if cp["downup_sample"] != 0:
        scale = 0.5 if cp["downup_sample"] == -1 else 2.0
        fh = scale_dimension(s1.shape[1], scale)
        fw = scale_dimension(s1.shape[2], scale)
        s1 = bilinear_resize_align_corners(s1, fh, fw)
    if s0.shape[1] != s1.shape[1] or s0.shape[2] != s1.shape[2]:
        s0 = bilinear_resize_align_corners(s0, s1.shape[1], s1.shape[2])

    B, H, W = s1.shape[0], s1.shape[1], s1.shape[2]
    M = B * H * W

    if cp["fused"] is not None:
        fp = cp["fused"]
        x0, _, _ = im2col(s0, 3, 3, 1, 1, fp["k0p"])
        x1, _, _ = im2col(s1, 3, 3, 1, 1, fp["k1p"])
        concat_feature = fused_cell_call(x0, x1, fp).reshape(B, H, W, fp["n_orig"])
        return prev_input, concat_feature

    # ---- generic fallback: per-branch conv+BN+ReLU, sum, lane-dense spike ----
    states = [s0, s1]
    patch_cache = {}

    def patches_for(idx, kp):
        if idx not in patch_cache:
            p, _, _ = im2col(states[idx], 3, 3, 1, 1, kp)
            patch_cache[idx] = p
        return patch_cache[idx]

    branches = cp["branches"]
    offset = 0
    op_idx = 0
    for _ in range(cp["steps"]):
        acc = None
        n_before = len(states)
        for j in range(n_before):
            if (offset + j) in branches:
                op = cp["ops"][op_idx]
                y = matmul_shift_act(patches_for(j, op["kp"]), op, act="relu")
                acc = y if acc is None else acc + y
                op_idx += 1
        spike = heaviside_spike(acc).reshape(B, H, W, cp["c_out"])
        offset += n_before
        states.append(spike)

    concat_feature = jnp.concatenate(states[-cp["block_multiplier"]:], axis=-1)
    return prev_input, concat_feature


def model_forward(params, x_nchw, x_spade_nchw, is_first):
    del x_spade_nchw  # spade_type == 0 path: x_spade unused
    del is_first      # is_first == 1 assumed: all membranes start from zero
    x = jnp.transpose(x_nchw, (0, 2, 3, 1))  # NCHW -> NHWC

    # stem0: SNN_2d_lsnn_thresh ~ 1x1 conv + BN + LIF spike (spike fused in epilogue)
    stem0 = conv_bn_act(x, params["stem0"], act="lif")
    # stem2: SNN_2d_1 ~ 3x3 stride-2 conv + BN + LIF spike (spike fused in epilogue)
    stem1 = conv_bn_act(stem0, params["stem2"], act="lif")

    two_last_inputs = (stem0, stem1)
    low_level_feature = None
    for i, cp in enumerate(params["cells"]):
        two_last_inputs = cell_forward(cp, two_last_inputs[0], two_last_inputs[1])
        if i == 2:
            low_level_feature = two_last_inputs[1]
    last_output = two_last_inputs[-1]
    if low_level_feature is None:
        low_level_feature = last_output

    # back to NCHW, f32 (PyTorch-consistent outputs)
    return (jnp.transpose(last_output, (0, 3, 1, 2)).astype(jnp.float32),
            jnp.transpose(low_level_feature, (0, 3, 1, 2)).astype(jnp.float32))


# ----------------------------------------------------------------------------
if __name__ == "__main__":
    # Architecture descriptors (numpy, as newModel expects).
    # network_arch: (NUM_LAYERS, 4 levels, 3 branches); level 0 / "same-scale" everywhere.
    network_arch = np.zeros((NUM_LAYERS, 4, 3), dtype=np.float32)
    network_arch[:, 0, 1] = 1.0
    # cell_arch (block_multiplier == 3 layout): two ops per step, taking s0 and s1.
    cell_arch = np.array([[0, 1], [1, 1], [2, 1], [3, 1], [5, 1], [6, 1]], dtype=np.int64)

    key = jax.random.PRNGKey(0)
    kparams, kx, kspade = jax.random.split(key, 3)
    params = build_model(kparams, network_arch, cell_arch)

    B, Cin, H, W = 2, INITIAL_CHANNELS, 16, 16
    x = jax.random.normal(kx, (B, Cin, H, W), dtype=jnp.float32)
    x_spade = jax.random.normal(kspade, (B, 4, H, W), dtype=jnp.float32)  # unused (spade_type=0)

    last_output, low_level_feature = model_forward(params, x, x_spade, is_first=1)
    jax.block_until_ready((last_output, low_level_feature))

    assert last_output.shape == (B, BLOCK_MULTIPLIER * FILTER_MULTIPLIER, H // 2, W // 2)
    assert low_level_feature.shape == last_output.shape
    print("KERNEL_OK")
</pallas_src>

<mosaic_0001>
module attributes {stable_mosaic.version = 11 : i64} {
  func.func @_matmul_shift_act_kernel(%arg0: i32, %arg1: memref<256x128xbf16, #tpu.memory_space<vmem>>, %arg2: memref<128x128xbf16, #tpu.memory_space<vmem>>, %arg3: memref<1x128xf32, #tpu.memory_space<vmem>>, %arg4: memref<256x128xbf16, #tpu.memory_space<vmem>>) attributes {dimension_semantics = [#tpu.dimension_semantics<parallel>], iteration_bounds = array<i64: 2>, scalar_prefetch = 0 : i64, scratch_operands = 0 : i64, tpu.core_type = #tpu.core_type<tc>, window_params = [{transform_indices = @transform_0, window_bounds = array<i64: 256, 128>}, {pipeline_mode = #tpu.pipeline_mode<synchronous>, transform_indices = @transform_1, window_bounds = array<i64: 128, 128>}, {pipeline_mode = #tpu.pipeline_mode<synchronous>, transform_indices = @transform_2, window_bounds = array<i64: 1, 128>}, {transform_indices = @transform_3, window_bounds = array<i64: 256, 128>}]} {
    %c0 = arith.constant 0 : index
    %c0_0 = arith.constant 0 : index
    %0 = vector.load %arg1[%c0, %c0_0] : memref<256x128xbf16, #tpu.memory_space<vmem>>, vector<256x128xbf16>
    %c0_1 = arith.constant 0 : index
    %c0_2 = arith.constant 0 : index
    %1 = vector.load %arg2[%c0_1, %c0_2] : memref<128x128xbf16, #tpu.memory_space<vmem>>, vector<128x128xbf16>
    %cst = arith.constant dense<0.000000e+00> : vector<256x128xf32>
    %2 = tpu.matmul %0, %1, %cst {dimension_numbers = #tpu.dot_dimension_numbers<[1], [0], [0], [1], [0, 0, 1, 1], [], []>} : vector<256x128xbf16>, vector<128x128xbf16>, vector<256x128xf32> -> vector<256x128xf32>
    %c0_3 = arith.constant 0 : index
    %c0_4 = arith.constant 0 : index
    %3 = vector.load %arg3[%c0_3, %c0_4] : memref<1x128xf32, #tpu.memory_space<vmem>>, vector<1x128xf32>
    %4 = vector.broadcast %3 : vector<1x128xf32> to vector<256x128xf32>
    %5 = arith.addf %2, %4 : vector<256x128xf32>
    %cst_5 = arith.constant 5.000000e-01 : f32
    %6 = vector.broadcast %cst_5 : f32 to vector<256x128xf32>
    %7 = arith.cmpf ogt, %5, %6 : vector<256x128xf32>
    %8 = arith.extui %7 : vector<256x128xi1> to vector<256x128xi32>
    %9 = arith.sitofp %8 : vector<256x128xi32> to vector<256x128xf32>
    %10 = arith.truncf %9 : vector<256x128xf32> to vector<256x128xbf16>
    %c0_6 = arith.constant 0 : index
    %c0_7 = arith.constant 0 : index
    %11 = vector.load %arg4[%c0_6, %c0_7] : memref<256x128xbf16, #tpu.memory_space<vmem>>, vector<256x128xbf16>
    tpu.vector_store %arg4[%c0_6, %c0_7], %10 {strides = array<i32>} : memref<256x128xbf16, #tpu.memory_space<vmem>>, vector<256x128xbf16>,
    return
  }
  func.func @transform_0(%arg0: i32) -> (i32, i32) {
    %c0_i32 = arith.constant 0 : i32
    %c0_i32_0 = arith.constant 0 : i32
    return %arg0, %c0_i32 : i32, i32
  }
  func.func @transform_1(%arg0: i32) -> (i32, i32) {
    %c0_i32 = arith.constant 0 : i32
    %c0_i32_0 = arith.constant 0 : i32
    %c0_i32_1 = arith.constant 0 : i32
    return %c0_i32, %c0_i32_0 : i32, i32
  }
  func.func @transform_2(%arg0: i32) -> (i32, i32) {
    %c0_i32 = arith.constant 0 : i32
    %c0_i32_0 = arith.constant 0 : i32
    %c0_i32_1 = arith.constant 0 : i32
    return %c0_i32, %c0_i32_0 : i32, i32
  }
  func.func @transform_3(%arg0: i32) -> (i32, i32) {
    %c0_i32 = arith.constant 0 : i32
    %c0_i32_0 = arith.constant 0 : i32
    return %arg0, %c0_i32 : i32, i32
  }
}

</mosaic_0001>

<bundles_post_ra>
// kernel: tpu_custom_call.1
= control target key start
LH: loop header
LB: loop body
LE: loop exit
PB: predicated region body
PF: predicated region fallthrough
CT: control target
= control target key end

     0   :  { %8 = vsyncpa [#allocation3], 0  ;;  %s1771_s0 = inlined_call_operand.hbm [shape: bf16[512,128], index: 0, kind: input, shape index: {}]   ;;  %s1772_s1 = inlined_call_operand.hbm [shape: bf16[128,128], index: 1, kind: input, shape index: {}]   ;;  %s1773_s2 = inlined_call_operand.vmem [shape: f32[1,128], index: 2, kind: input, shape index: {}]   ;;  %s1774_s3 = inlined_call_operand.hbm [shape: bf16[512,128], index: 3, kind: output, shape index: {}]  }
   0x1   :  { %10 = vsyncpa [#allocation3 + $0x1], 0 }
   0x2   :  { %11 = vsyncpa [#allocation6], 0 }
   0x3   :  { %12 = vsyncpa [#allocation4], 0 }
   0x4   :  { %14 = vsyncpa [#allocation4 + $0x1], 0  ;;  %s1454_s12 = smov 0   ;;  %s1456_s13 = smov 0  }
   0x5   :  { %s1458_s14 = smov 0   ;;  %s1460_s15 = smov 0  }
   0x6 LB: > { %s1475_s16 = sadd.s32 4294967295, %s1424_s15   ;;  %s920_s17 = sadd.s32 4294967294, %s1424_s15   ;;  %s1424_s15 = sphi %s1460_s15, %s1794_s15   ;;  %s1420_s14 = sphi %s1458_s14, %s1793_s14   ;;  %s1416_s13 = sphi %s1456_s13, %s1792_s13   ;;  %s1412_s12 = sphi %s1454_s12, %s1791_s12  }
   0x7   : > { %p40_p0 = scmp.ne.s32.totalorder %s1416_s13, %s1412_s12  ;;  %p1775_p1 = scmp.eq.s32.totalorder %s1475_s16, 0 }
   0x8   : > { %p112_p3 = scmp.eq.s32.totalorder %s920_s17, 1  ;;  %p921_p5 = scmp.ge.s32.totalorder %s1424_s15, 1 }
   0x9   : > { %p1484_p4 = por %p1775_p1, %p40_p0  ;;  %p119_p7 = scmp.lt.s32.totalorder %s1424_s15, 3 }
   0xa   : > { %p1489_p6 = por %p112_p3, %p40_p0  ;;  %s1426_s21 = smov [#allocation5]  }
   0xb   : > { %s1778_s18 = scalar_select %p1484_p4, 1, 0 }
   0xc   : > { %s1779_s19 = scalar_select %p1489_p6, 1, 0 }
   0xd   : > { %p1494_p8 = pnand %p921_p5, %p119_p7  ;;  %s131_s22 = sshll.u32 %s1426_s21, 4  ;;  %s1498_s22 = int_to_ptr.vmem [resolvable:$true] %s131_s22 }
   0xe   : > { %s1510_s24 = sadd.s32 1, %s1424_s15   ;;  %s27_s25 = sadd.s32 1, %s1420_s14 }
   0xf   : > { %s1780_s20 = scalar_select %p1494_p8, 1, 0 }
  0x10   : > { %p1218_p9 = pneg %p1494_p8  ;;  %s24_s26 = ssub.s32 %s1424_s15, %s1510_s24 }
  0x11   : > { %s1296_s29 = scalar_lea.hbm %s1772_s1, 1024 }
  0x12   : > { %p1505_p11 = pnand %p1218_p9, %p1775_p1  ;;  %p1297_p12 = scmp.ne.s32.totalorder %s1772_s1, %s1296_s29 }
  0x13   : > { %p1303_p5 = scmp.lt.u32.totalorder %s1296_s29, %s1772_s1 }
  0x14   : > { %p1298_p13 = pneg %p1505_p11 }
  0x16   : > { %p1299_p0 = pnand %p1298_p13, %p1297_p12 }
  0x18   : > { %p1300_p3 = pneg %p1299_p0 }
  0x1a   : > { %p1305_p7 = pnand %p1303_p5, %p1300_p3 }
  0x1c   : > { %1308 = shalt.err (!%p1305_p7)
}
  0x1d   : > { %s1309_s7 = scalar_lea.vmem %s1498_s22, 1024  ;;  %p1317_p2 = scmp.lt.s32.totalorder %s1498_s22, %s1498_s22 }
  0x1e   : > { %p1310_p9 = scmp.ne.s32.totalorder %s1498_s22, %s1309_s7  ;;  %p1318_p6 = scmp.lt.s32.totalorder %s1309_s7, %s1309_s7 }
  0x20   : > { %p1312_p10 = pnand %p1310_p9, %p1298_p13  ;;  %p1319_p4 = por %p1318_p6, %p1317_p2 }
  0x22   : > { %p1313_p1 = pneg %p1312_p10 }
  0x24   : > { %p1320_p8 = pnand %p1319_p4, %p1313_p1 }
  0x26   : > { %1323 = shalt.err (!%p1320_p8)
}
  0x27   : > { %s1427_s8 = smov 64   ;;  %s1428_s9 = smov 4  }
  0x28   : > { %1221 = dma.hbm_to_vmem [thread:$0]  (!%p1505_p11), %s1772_s1, 1024, %s1498_s22, [#allocation6], %s1427_s8, %s1427_s8, %s1428_s9  }
  0x29   : > { %p25_p1 = scmp.eq.s32.totalorder %s24_s26, 0  ;;  %p34_p2 = scmp.ne.s32.totalorder %s1420_s14, %s1416_s13 }
  0x2a   : > { %p35_p4 = scmp.eq.s32.totalorder %s1424_s15, 0  ;;  %p1231_p6 = scmp.lt.s32.totalorder %s1424_s15, 2 }
  0x2b   : > { %s1544_s17 = scalar_select %p25_p1, %s1420_s14, %s27_s25  }
  0x2c   : > { %p36_p8 = por %p35_p4, %p34_p2  ;;  %p1782_p10 = scmp.eq.s32.totalorder %s1475_s16, 1 }
  0x2d   : > { %s148_s23 = sand.u32 1, %s1420_s14   ;;  %s1025_s27 = sshll.u32 %s1424_s15, 11 }
  0x2e   : > { %p1548_p12 = por %p1782_p10, %p34_p2  ;;  %s924_s28 = sshll.u32 %s148_s23, 7 }
  0x2f   : > { %s1557_s4 = scalar_lea.hbm %s1771_s0, %s1025_s27  ;;  %s152_s22 = scalar_lea.vmem [#allocation2], %s924_s28 }
  0x30   : > { %s159_s25 = sshll.u32 %s152_s22, 4  ;;  %p1559_p11 = pnand %p1231_p6, %p36_p8  ;;  %s1563_s25 = int_to_ptr.vmem [resolvable:$true] %s159_s25 }
  0x31   : > { %s1565_s5 = scalar_lea.sflag [#allocation3], %s148_s23  ;;  %s1324_s6 = scalar_lea.hbm %s1557_s4, 2048 }
  0x32   : > { %p1325_p13 = scmp.ne.s32.totalorder %s1557_s4, %s1324_s6  ;;  %p1326_p0 = pneg %p1559_p11 }
  0x33   : > { %s1329_s11 = scalar_lea.hbm %s1771_s0, 4096  ;;  %p1330_p7 = scmp.lt.u32.totalorder %s1557_s4, %s1771_s0 }
  0x34   : > { %p1327_p3 = pnand %p1326_p0, %p1325_p13  ;;  %p1331_p9 = scmp.lt.u32.totalorder %s1329_s11, %s1324_s6 }
  0x35   : > { %p1333_p2 = scmp.lt.u32.totalorder %s1324_s6, %s1557_s4 }
  0x36   : > { %p1328_p5 = pneg %p1327_p3  ;;  %p1332_p1 = por %p1331_p9, %p1330_p7 }
  0x38   : > { %p1334_p4 = por %p1333_p2, %p1332_p1 }
  0x3a   : > { %p1335_p6 = pnand %p1334_p4, %p1328_p5 }
  0x3c   : > { %1338 = shalt.err (!%p1335_p6)
}
  0x3d   : > { %s1339_s23 = scalar_lea.vmem %s1563_s25, 2048  ;;  %s1429_s29 = smov [#allocation2]  }
  0x3e   : > { %p1340_p8 = scmp.ne.s32.totalorder %s1563_s25, %s1339_s23  ;;  %s1344_s30 = sshll.u32 %s1429_s29, 4  ;;  %s1345_s30 = int_to_ptr.vmem [resolvable:$false] %s1344_s30 }
  0x3f   : > { %s1346_s22 = scalar_lea.vmem %s1345_s30, 4096  ;;  %p1347_p3 = scmp.lt.s32.totalorder %s1563_s25, %s1345_s30 }
  0x40   : > { %p1342_p10 = pnand %p1340_p8, %p1326_p0  ;;  %p1348_p7 = scmp.lt.s32.totalorder %s1346_s22, %s1339_s23 }
  0x42   : > { %p1343_p13 = pneg %p1342_p10  ;;  %p1349_p9 = por %p1348_p7, %p1347_p3 }
  0x44   : > { %p1350_p1 = pnand %p1349_p9, %p1343_p13 }
  0x46   : > { %1353 = shalt.err (!%p1350_p1)
}
  0x47   : > { %1225 = dma.hbm_to_vmem [thread:$0]  (!%p1559_p11), %s1557_s4, 2048, %s1563_s25, %s1565_s5, %s1427_s8, %s1427_s8, %s1428_s9  }
  0x48   : > { %p1785_p0 = scmp.ne.s32.totalorder %s1780_s20, 0 }
  0x49   : > { %s1599_s6 = sand.u32 (!%p1785_p0), 1, %s1416_s13   ;;  %p1786_p5 = scmp.ne.s32.totalorder (!%p1785_p0), %s1778_s18, 0 }
  0x4a   : > { %171 = sbr.rel (%p1785_p0) target bundleno = 379 (0x17b), region = 32  ;;  %s928_s7 = sshll.u32 (!%p1785_p0), %s1599_s6, 7 }
  0x4b   : > { %s174_s10 = scalar_lea.sflag (!%p1785_p0), [#allocation3], %s1599_s6  ;;  %s1605_s26 = scalar_lea.vmem (!%p1785_p0), [#allocation2], %s928_s7 }
  0x51   : > { %1399 = dma.done.wait (%p1786_p5), %s174_s10, 2048  }
  0x52   : > { %1401 = vsyncadd (%p1786_p5), %s174_s10, 4294965248  ;;  %p1787_p11 = scmp.eq.s32.totalorder %s1475_s16, 0 }
  0x54   : > { %1403 = dma.done.wait (%p1787_p11), [#allocation6], 1024   ;;  %p1788_p2 = pmov %p1787_p11 }
  0x55   : > { %v1272_v0 = vld [vmem:[#allocation5] sm:$0xff]   ;;  %v1273_v1 = vld [vmem:[#allocation5 + $0x8] sm:$0xff]   ;;  %v1274_v2 = vld [vmem:[#allocation5 + $0x10] sm:$0xff]   ;;  %v1430_v39 = vmov 0.0   ;;  %s1652_s8 = scalar_lea.vmem [#allocation7], %s928_s7  ;;  %s1058_s9 = sshll.u32 %s1475_s16, 11 }
  0x56   : > { %1405 = vsyncadd (%p1788_p2), [#allocation6], 4294966272  ;;  %1146 = vmatprep.subr.bf16.mxu0 %v1272_v0  ;;  %1194 = vmatprep.subr.bf16.mxu1 %v1272_v0  ;;  %v1275_v3 = vld [vmem:[#allocation5 + $0x18] sm:$0xff]   ;;  %v1280_v4 = vld [vmem:[%s1605_s26] sm:$0xff]   ;;  %s837_s4 = sshll.u32 %s1652_s8, 4  ;;  %s1723_s5 = scalar_lea.hbm %s1774_s3, %s1058_s9  ;;  %s1725_s4 = int_to_ptr.vmem [resolvable:$true] %s837_s4 }
  0x57   : > { %1147 = vmatpush3.bf16.msra.mxu0 %v1272_v0  ;;  %1202 = vmatpush3.bf16.msra.mxu1 %v1272_v0  ;;  %v1281_v5 = vld [vmem:[%s1605_s26 + $0x40] sm:$0xff]   ;;  %v1277_v7 = vld [vmem:[#allocation5 + $0x28] sm:$0xff]   ;;  %v1278_v8 = vld [vmem:[#allocation5 + $0x30] sm:$0xff]   ;;  %s824_s11 = scalar_lea.sflag [#allocation4], %s1599_s6  ;;  %s1354_s27 = scalar_lea.vmem %s1725_s4, 2048 }
  0x58   : > { %1148 = vmatprep.subr.bf16.mxu0 %v1273_v1  ;;  %1195 = vmatprep.subr.bf16.mxu1 %v1273_v1  ;;  %v1276_v6 = vld [vmem:[#allocation5 + $0x20] sm:$0xff]   ;;  %v1279_v9 = vld [vmem:[#allocation5 + $0x38] sm:$0xff]   ;;  %v1282_v10 = vld [vmem:[%s1605_s26 + $0x8] sm:$0xff]   ;;  %p1355_p4 = scmp.ne.s32.totalorder %s1725_s4, %s1354_s27  ;;  %s1431_s28 = smov [#allocation7]  }
  0x59   : > { %1162 = vmatprep.mubr.bf16.mxu0 %v1280_v4  ;;  %1178 = vmatprep.mubr.bf16.mxu1 %v1281_v5  ;;  %v1283_v11 = vld [vmem:[%s1605_s26 + $0x48] sm:$0xff]   ;;  %v1284_v12 = vld [vmem:[%s1605_s26 + $0x10] sm:$0xff]   ;;  %v1286_v14 = vld [vmem:[%s1605_s26 + $0x18] sm:$0xff]   ;;  %s1358_s23 = sshll.u32 %s1431_s28, 4  ;;  %s1359_s23 = int_to_ptr.vmem [resolvable:$false] %s1358_s23 }
  0x5a   : > { %v1285_v13 = vld [vmem:[%s1605_s26 + $0x50] sm:$0xff]   ;;  %v1287_v15 = vld [vmem:[%s1605_s26 + $0x58] sm:$0xff]   ;;  %v1288_v16 = vld [vmem:[%s1605_s26 + $0x20] sm:$0xff]   ;;  %p1356_p6 = pnand %p1355_p4, %p1548_p12  ;;  %s1360_s29 = scalar_lea.vmem %s1359_s23, 4096 }
  0x5b   : > { %1149 = vmatpush3.bf16.msra.mxu0 %v1273_v1  ;;  %1203 = vmatpush3.bf16.msra.mxu1 %v1273_v1  ;;  %v1289_v17 = vld [vmem:[%s1605_s26 + $0x60] sm:$0xff]   ;;  %v1290_v18 = vld [vmem:[%s1605_s26 + $0x28] sm:$0xff]   ;;  %v1292_v20 = vld [vmem:[%s1605_s26 + $0x30] sm:$0xff]   ;;  %p1361_p10 = scmp.lt.s32.totalorder %s1725_s4, %s1359_s23  ;;  %p1362_p13 = scmp.lt.s32.totalorder %s1360_s29, %s1354_s27 }
  0x5c   : > { %1150 = vmatprep.subr.bf16.mxu0 %v1274_v2  ;;  %1196 = vmatprep.subr.bf16.mxu1 %v1274_v2  ;;  %v1291_v19 = vld [vmem:[%s1605_s26 + $0x68] sm:$0xff]   ;;  %v1293_v21 = vld [vmem:[%s1605_s26 + $0x70] sm:$0xff]   ;;  %v1294_v22 = vld [vmem:[%s1605_s26 + $0x38] sm:$0xff]   ;;  %p1357_p8 = pneg %p1356_p6 }
  0x5d   : > { %v1295_v23 = vld [vmem:[%s1605_s26 + $0x78] sm:$0xff]   ;;  %v1634_v24 = vld [vmem:[%s1773_s2] ss:$0 sm:$0xff]  ;;  %p1363_p3 = por %p1362_p13, %p1361_p10 }
  0x5f   : > { %1151 = vmatpush3.bf16.msra.mxu0 %v1274_v2  ;;  %1204 = vmatpush3.bf16.msra.mxu1 %v1274_v2  ;;  %p1364_p7 = pnand %p1363_p3, %p1357_p8 }
  0x60   : > { %1152 = vmatprep.subr.bf16.mxu0 %v1275_v3  ;;  %1197 = vmatprep.subr.bf16.mxu1 %v1275_v3 }
  0x63   : > { %1153 = vmatpush3.bf16.msra.mxu0 %v1275_v3  ;;  %1205 = vmatpush3.bf16.msra.mxu1 %v1275_v3 }
  0x64   : > { %1154 = vmatprep.subr.bf16.mxu0 %v1276_v6  ;;  %1198 = vmatprep.subr.bf16.mxu1 %v1276_v6 }
  0x67   : > { %1155 = vmatpush3.bf16.msra.mxu0 %v1276_v6  ;;  %1206 = vmatpush3.bf16.msra.mxu1 %v1276_v6 }
  0x68   : > { %1156 = vmatprep.subr.bf16.mxu0 %v1277_v7  ;;  %1199 = vmatprep.subr.bf16.mxu1 %v1277_v7 }
  0x6b   : > { %1157 = vmatpush3.bf16.msra.mxu0 %v1277_v7  ;;  %1207 = vmatpush3.bf16.msra.mxu1 %v1277_v7 }
  0x6c   : > { %1158 = vmatprep.subr.bf16.mxu0 %v1278_v8  ;;  %1200 = vmatprep.subr.bf16.mxu1 %v1278_v8 }
  0x6f   : > { %1159 = vmatpush3.bf16.msra.mxu0 %v1278_v8  ;;  %1208 = vmatpush3.bf16.msra.mxu1 %v1278_v8 }
  0x70   : > { %1160 = vmatprep.subr.bf16.mxu0 %v1279_v9  ;;  %1201 = vmatprep.subr.bf16.mxu1 %v1279_v9 }
  0x73   : > { %1161 = vmatpush3.bf16.msra.mxu0 %v1279_v9  ;;  %1209 = vmatpush3.bf16.msra.mxu1 %v1279_v9 }
  0x76   : > { %1163 = vmatmul.mubr.bf16.vlgmr.msra.gmra.mrb[0].mxu0 %v1282_v10  ;;  %1179 = vmatmul.mubr.bf16.vlgmr.msra.gmra.mrb[0].mxu1 %v1283_v11 }
  0x77   : > { %1166 = vmatprep.mubr.bf16.mxu0 %v1284_v12  ;;  %1182 = vmatprep.mubr.bf16.mxu1 %v1285_v13 }
  0x7e   : > { %1167 = vmatmul.mubr.bf16.gmra.mrb[4].mxu0 %v1286_v14  ;;  %1183 = vmatmul.mubr.bf16.gmra.mrb[4].mxu1 %v1287_v15 }
  0x7f   : > { %1170 = vmatprep.mubr.bf16.mxu0 %v1288_v16  ;;  %1186 = vmatprep.mubr.bf16.mxu1 %v1289_v17 }
  0x86   : > { %1171 = vmatmul.mubr.bf16.gmra.mrb[8].mxu0 %v1290_v18  ;;  %1187 = vmatmul.mubr.bf16.gmra.mrb[8].mxu1 %v1291_v19 }
  0x87   : > { %1174 = vmatprep.mubr.bf16.mxu0 %v1292_v20  ;;  %1190 = vmatprep.mubr.bf16.mxu1 %v1293_v21 }
  0x8e   : > { %1175 = vmatmul.mubr.bf16.gmra.mrb[12].mxu0 %v1294_v22  ;;  %1191 = vmatmul.mubr.bf16.gmra.mrb[12].mxu1 %v1295_v23 }
 0x149   : > { %v1164_v25 = vpop.f32.mrb[0].mxu0  ;;  %v1180_v26 = vpop.f32.mrb[0].mxu1 }
 0x14a   : > { %v449_v27 = vadd.f32 %v1164_v25, %v1634_v24  ;;  %v513_v28 = vadd.f32 %v1180_v26, %v1634_v24  ;;  %v440_v29 = vpop.f32.mrb[1].mxu0  ;;  %v504_v30 = vpop.f32.mrb[1].mxu1 }
 0x14b   : > { %v441_v31 = vadd.f32 %v1634_v24, %v440_v29  ;;  %v505_v32 = vadd.f32 %v1634_v24, %v504_v30  ;;  %v1165_v33 = vpop.f32.mrb[2].mxu0  ;;  %v1181_v34 = vpop.f32.mrb[2].mxu1 }
 0x14c   : > { %vm569_vm0 = vcmp.gt.f32.partialorder %v449_v27, 0.5  ;;  %vm585_vm1 = vcmp.gt.f32.partialorder %v513_v28, 0.5  ;;  %v452_v35 = vadd.f32 %v1165_v33, %v1634_v24  ;;  %v516_v36 = vadd.f32 %v1181_v34, %v1634_v24  ;;  %v443_v37 = vpop.f32.mrb[3].mxu0  ;;  %v507_v38 = vpop.f32.mrb[3].mxu1 }
 0x14d   : > { %v958_v40 = vsel %vm569_vm0, 1.0, %v1430_v39  ;;  %v974_v41 = vsel %vm585_vm1, 1.0, %v1430_v39  ;;  %vm567_vm2 = vcmp.gt.f32.partialorder %v441_v31, 0.5  ;;  %vm583_vm3 = vcmp.gt.f32.partialorder %v505_v32, 0.5 }
 0x14e   : > { %vm570_vm4 = vcmp.gt.f32.partialorder %v452_v35, 0.5  ;;  %vm586_vm5 = vcmp.gt.f32.partialorder %v516_v36, 0.5  ;;  %v444_v44 = vadd.f32 %v1634_v24, %v443_v37  ;;  %v508_v45 = vadd.f32 %v1634_v24, %v507_v38 }
 0x14f   : > { %v959_v42 = vsel %vm570_vm4, 1.0, %v1430_v39  ;;  %v975_v43 = vsel %vm586_vm5, 1.0, %v1430_v39  ;;  %v956_v48 = vsel %vm567_vm2, 1.0, %v1430_v39  ;;  %v972_v49 = vsel %vm583_vm3, 1.0, %v1430_v39 }
 0x150   : > { %v1063_v46 = vpack.c.bf16 %v959_v42, %v958_v40  ;;  %v1087_v47 = vpack.c.bf16 %v975_v43, %v974_v41  ;;  %vm568_vm6 = vcmp.gt.f32.partialorder %v444_v44, 0.5  ;;  %vm584_vm7 = vcmp.gt.f32.partialorder %v508_v45, 0.5 }
 0x151   : > { %v1168_v50 = vpop.f32.mrb[4].mxu0  ;;  %v1184_v51 = vpop.f32.mrb[4].mxu1  ;;  %v957_v52 = vsel %vm568_vm6, 1.0, %v1430_v39  ;;  %v973_v53 = vsel %vm584_vm7, 1.0, %v1430_v39 }
 0x152   : > { %1107 = vst [vmem:[%s1652_s8 + $0x8] sm:$0xff] %v1063_v46   ;;  %1115 = vst [vmem:[%s1652_s8 + $0x48] sm:$0xff] %v1087_v47   ;;  %v465_v54 = vadd.f32 %v1168_v50, %v1634_v24  ;;  %v529_v55 = vadd.f32 %v1184_v51, %v1634_v24  ;;  %v456_v56 = vpop.f32.mrb[5].mxu0  ;;  %v520_v57 = vpop.f32.mrb[5].mxu1  ;;  %v1060_v58 = vpack.c.bf16 %v957_v52, %v956_v48 }
 0x153   : > { %v1084_v59 = vpack.c.bf16 %v973_v53, %v972_v49  ;;  %v457_v60 = vadd.f32 %v1634_v24, %v456_v56  ;;  %v521_v61 = vadd.f32 %v1634_v24, %v520_v57  ;;  %v1169_v62 = vpop.f32.mrb[6].mxu0  ;;  %v1185_v63 = vpop.f32.mrb[6].mxu1 }
 0x154   : > { %vm573_vm8 = vcmp.gt.f32.partialorder %v465_v54, 0.5  ;;  %vm589_vm9 = vcmp.gt.f32.partialorder %v529_v55, 0.5  ;;  %v468_v0 = vadd.f32 %v1169_v62, %v1634_v24  ;;  %v532_v1 = vadd.f32 %v1185_v63, %v1634_v24  ;;  %v459_v2 = vpop.f32.mrb[7].mxu0  ;;  %v523_v3 = vpop.f32.mrb[7].mxu1  ;;  %1061 = vst [vmem:[%s1652_s8] sm:$0xff] %v1060_v58  }
 0x155   : > { %1114 = vst [vmem:[%s1652_s8 + $0x40] sm:$0xff] %v1084_v59   ;;  %v962_v4 = vsel %vm573_vm8, 1.0, %v1430_v39  ;;  %v978_v5 = vsel %vm589_vm9, 1.0, %v1430_v39  ;;  %vm571_vm10 = vcmp.gt.f32.partialorder %v457_v60, 0.5  ;;  %vm587_vm11 = vcmp.gt.f32.partialorder %v521_v61, 0.5 }
 0x156   : > { %vm574_vm12 = vcmp.gt.f32.partialorder %v468_v0, 0.5  ;;  %vm590_vm13 = vcmp.gt.f32.partialorder %v532_v1, 0.5  ;;  %v460_v8 = vadd.f32 %v1634_v24, %v459_v2  ;;  %v524_v9 = vadd.f32 %v1634_v24, %v523_v3 }
 0x157   : > { %v963_v6 = vsel %vm574_vm12, 1.0, %v1430_v39  ;;  %v979_v7 = vsel %vm590_vm13, 1.0, %v1430_v39  ;;  %v960_v12 = vsel %vm571_vm10, 1.0, %v1430_v39  ;;  %v976_v13 = vsel %vm587_vm11, 1.0, %v1430_v39 }
 0x158   : > { %v1069_v10 = vpack.c.bf16 %v963_v6, %v962_v4  ;;  %v1093_v11 = vpack.c.bf16 %v979_v7, %v978_v5  ;;  %vm572_vm14 = vcmp.gt.f32.partialorder %v460_v8, 0.5  ;;  %vm588_vm15 = vcmp.gt.f32.partialorder %v524_v9, 0.5 }
 0x159   : > { %v1172_v14 = vpop.f32.mrb[8].mxu0  ;;  %v1188_v15 = vpop.f32.mrb[8].mxu1  ;;  %v961_v16 = vsel %vm572_vm14, 1.0, %v1430_v39  ;;  %v977_v17 = vsel %vm588_vm15, 1.0, %v1430_v39 }
 0x15a   : > { %1109 = vst [vmem:[%s1652_s8 + $0x18] sm:$0xff] %v1069_v10   ;;  %1117 = vst [vmem:[%s1652_s8 + $0x58] sm:$0xff] %v1093_v11   ;;  %v481_v18 = vadd.f32 %v1172_v14, %v1634_v24  ;;  %v545_v19 = vadd.f32 %v1188_v15, %v1634_v24  ;;  %v472_v20 = vpop.f32.mrb[9].mxu0  ;;  %v536_v21 = vpop.f32.mrb[9].mxu1  ;;  %v1066_v22 = vpack.c.bf16 %v961_v16, %v960_v12 }
 0x15b   : > { %v1090_v23 = vpack.c.bf16 %v977_v17, %v976_v13  ;;  %v473_v25 = vadd.f32 %v1634_v24, %v472_v20  ;;  %v537_v26 = vadd.f32 %v1634_v24, %v536_v21  ;;  %v1173_v27 = vpop.f32.mrb[10].mxu0  ;;  %v1189_v28 = vpop.f32.mrb[10].mxu1 }
 0x15c   : > { %vm577_vm0 = vcmp.gt.f32.partialorder %v481_v18, 0.5  ;;  %vm593_vm1 = vcmp.gt.f32.partialorder %v545_v19, 0.5  ;;  %v484_v29 = vadd.f32 %v1173_v27, %v1634_v24  ;;  %v548_v30 = vadd.f32 %v1189_v28, %v1634_v24  ;;  %v475_v31 = vpop.f32.mrb[11].mxu0  ;;  %v539_v32 = vpop.f32.mrb[11].mxu1  ;;  %1108 = vst [vmem:[%s1652_s8 + $0x10] sm:$0xff] %v1066_v22  }
 0x15d   : > { %1116 = vst [vmem:[%s1652_s8 + $0x50] sm:$0xff] %v1090_v23   ;;  %v966_v33 = vsel %vm577_vm0, 1.0, %v1430_v39  ;;  %v982_v34 = vsel %vm593_vm1, 1.0, %v1430_v39  ;;  %vm575_vm2 = vcmp.gt.f32.partialorder %v473_v25, 0.5  ;;  %vm591_vm3 = vcmp.gt.f32.partialorder %v537_v26, 0.5 }
 0x15e   : > { %vm578_vm4 = vcmp.gt.f32.partialorder %v484_v29, 0.5  ;;  %vm594_vm5 = vcmp.gt.f32.partialorder %v548_v30, 0.5  ;;  %v476_v37 = vadd.f32 %v1634_v24, %v475_v31  ;;  %v540_v38 = vadd.f32 %v1634_v24, %v539_v32 }
 0x15f   : > { %v967_v35 = vsel %vm578_vm4, 1.0, %v1430_v39  ;;  %v983_v36 = vsel %vm594_vm5, 1.0, %v1430_v39  ;;  %v964_v42 = vsel %vm575_vm2, 1.0, %v1430_v39  ;;  %v980_v43 = vsel %vm591_vm3, 1.0, %v1430_v39 }
 0x160   : > { %v1075_v40 = vpack.c.bf16 %v967_v35, %v966_v33  ;;  %v1099_v41 = vpack.c.bf16 %v983_v36, %v982_v34  ;;  %vm576_vm6 = vcmp.gt.f32.partialorder %v476_v37, 0.5  ;;  %vm592_vm7 = vcmp.gt.f32.partialorder %v540_v38, 0.5 }
 0x161   : > { %v1176_v44 = vpop.f32.mrb[12].mxu0  ;;  %v1192_v45 = vpop.f32.mrb[12].mxu1  ;;  %v965_v46 = vsel %vm576_vm6, 1.0, %v1430_v39  ;;  %v981_v47 = vsel %vm592_vm7, 1.0, %v1430_v39 }
 0x162   : > { %1111 = vst [vmem:[%s1652_s8 + $0x28] sm:$0xff] %v1075_v40   ;;  %1119 = vst [vmem:[%s1652_s8 + $0x68] sm:$0xff] %v1099_v41   ;;  %v497_v48 = vadd.f32 %v1176_v44, %v1634_v24  ;;  %v561_v49 = vadd.f32 %v1192_v45, %v1634_v24  ;;  %v488_v50 = vpop.f32.mrb[13].mxu0  ;;  %v552_v51 = vpop.f32.mrb[13].mxu1  ;;  %v1072_v52 = vpack.c.bf16 %v965_v46, %v964_v42 }
 0x163   : > { %v1096_v53 = vpack.c.bf16 %v981_v47, %v980_v43  ;;  %v489_v54 = vadd.f32 %v1634_v24, %v488_v50  ;;  %v553_v55 = vadd.f32 %v1634_v24, %v552_v51  ;;  %v1177_v56 = vpop.f32.mrb[14].mxu0  ;;  %v1193_v57 = vpop.f32.mrb[14].mxu1 }
 0x164   : > { %vm581_vm8 = vcmp.gt.f32.partialorder %v497_v48, 0.5  ;;  %vm597_vm9 = vcmp.gt.f32.partialorder %v561_v49, 0.5  ;;  %v500_v58 = vadd.f32 %v1177_v56, %v1634_v24  ;;  %v564_v59 = vadd.f32 %v1193_v57, %v1634_v24  ;;  %v491_v60 = vpop.f32.mrb[15].mxu0  ;;  %v555_v61 = vpop.f32.mrb[15].mxu1  ;;  %1110 = vst [vmem:[%s1652_s8 + $0x20] sm:$0xff] %v1072_v52  }
 0x165   : > { %1118 = vst [vmem:[%s1652_s8 + $0x60] sm:$0xff] %v1096_v53   ;;  %v970_v62 = vsel %vm581_vm8, 1.0, %v1430_v39  ;;  %v986_v63 = vsel %vm597_vm9, 1.0, %v1430_v39  ;;  %vm579_vm10 = vcmp.gt.f32.partialorder %v489_v54, 0.5  ;;  %vm595_vm11 = vcmp.gt.f32.partialorder %v553_v55, 0.5 }
 0x166   : > { %vm582_vm12 = vcmp.gt.f32.partialorder %v500_v58, 0.5  ;;  %vm598_vm13 = vcmp.gt.f32.partialorder %v564_v59, 0.5  ;;  %v492_v2 = vadd.f32 %v1634_v24, %v491_v60  ;;  %v556_v3 = vadd.f32 %v1634_v24, %v555_v61 }
 0x167   : > { %v971_v0 = vsel %vm582_vm12, 1.0, %v1430_v39  ;;  %v987_v1 = vsel %vm598_vm13, 1.0, %v1430_v39  ;;  %v968_v6 = vsel %vm579_vm10, 1.0, %v1430_v39  ;;  %v984_v7 = vsel %vm595_vm11, 1.0, %v1430_v39 }
 0x168   : > { %v1081_v4 = vpack.c.bf16 %v971_v0, %v970_v62  ;;  %v1105_v5 = vpack.c.bf16 %v987_v1, %v986_v63  ;;  %vm580_vm14 = vcmp.gt.f32.partialorder %v492_v2, 0.5  ;;  %vm596_vm15 = vcmp.gt.f32.partialorder %v556_v3, 0.5 }
 0x169   : > { %v969_v8 = vsel %vm580_vm14, 1.0, %v1430_v39  ;;  %v985_v24 = vsel %vm596_vm15, 1.0, %v1430_v39 }
 0x16a   : > { %1113 = vst [vmem:[%s1652_s8 + $0x38] sm:$0xff] %v1081_v4   ;;  %1121 = vst [vmem:[%s1652_s8 + $0x78] sm:$0xff] %v1105_v5   ;;  %v1078_v9 = vpack.c.bf16 %v969_v8, %v968_v6  ;;  %v1102_v10 = vpack.c.bf16 %v985_v24, %v984_v7 }
 0x16c   : > { %1112 = vst [vmem:[%s1652_s8 + $0x30] sm:$0xff] %v1078_v9   ;;  %1120 = vst [vmem:[%s1652_s8 + $0x70] sm:$0xff] %v1102_v10  }
 0x16d   : > { %1367 = shalt.err (!%p1364_p7)
}
 0x16e   : > { %s1368_s30 = scalar_lea.hbm %s1723_s5, 2048  ;;  %s1372_s10 = scalar_lea.hbm %s1774_s3, 4096 }
 0x16f   : > { %p1369_p9 = scmp.ne.s32.totalorder %s1723_s5, %s1368_s30  ;;  %p1373_p5 = scmp.lt.u32.totalorder %s1723_s5, %s1774_s3 }
 0x170   : > { %p1374_p11 = scmp.lt.u32.totalorder %s1372_s10, %s1368_s30  ;;  %p1376_p4 = scmp.lt.u32.totalorder %s1368_s30, %s1723_s5 }
 0x171   : > { %p1370_p1 = pnand %p1369_p9, %p1548_p12 }
 0x172   : > { %p1375_p2 = por %p1374_p11, %p1373_p5 }
 0x173   : > { %p1371_p0 = pneg %p1370_p1 }
 0x174   : > { %p1377_p6 = por %p1376_p4, %p1375_p2 }
 0x176   : > { %p1378_p8 = pnand %p1377_p6, %p1371_p0 }
 0x178   : > { %1381 = shalt.err (!%p1378_p8)
}
 0x179   : > { %s1432_s20 = smov 64   ;;  %s1433_s8 = smov 4  }
 0x17a   : > { %1216 = dma.vmem_to_hbm [thread:$0]  (%p1548_p12), %s1725_s4, 2048, %s1723_s5, %s824_s11, %s1432_s20, %s1432_s20, %s1433_s8  }
 0x17b PF: > { %s852_s9 = sand.u32 1, %s1412_s12   ;;  %p1789_p10 = scmp.ne.s32.totalorder %s1779_s19, 0 }
 0x17c   : > { %p1790_p13 = scmp.ge.s32.totalorder %s1424_s15, 2  ;;  %s853_s16 = scalar_lea.sflag [#allocation4], %s852_s9 }
 0x17e   : > { %p1227_p3 = pnand %p1790_p13, %p1789_p10 }
 0x180   : > { %1407 = dma.done.wait (!%p1227_p3), %s853_s16, 2048  }
 0x181   : > { %1409 = vsyncadd (!%p1227_p3), %s853_s16, 4294965248  ;;  %p17_p7 = scmp.ge.s32.totalorder %s1510_s24, 4   ;;  %s1791_s12 = smov %s1416_s13 }
 0x182   : > { %s1792_s13 = smov %s1420_s14  ;;  %s1793_s14 = smov %s1544_s17 }
 0x183   : > { %s1794_s15 = smov %s1510_s24  ;;  %19 = sbr.rel (!%p17_p7) target bundleno = 6 (0x6), region = 81 }
 0x18a   :  { %858 = vsyncpa [#allocation3], 1 }
 0x18b   :  { %860 = vsyncpa [#allocation3 + $0x1], 1 }
 0x18c   :  { %861 = vsyncpa [#allocation6], 1 }
 0x18d   :  { %862 = vsyncpa [#allocation4], 1 }
 0x18e   :  { %864 = vsyncpa [#allocation4 + $0x1], 1 }

</bundles_post_ra>
